<compile_context>
chip_gen: v5e
topology: v5e:2x2
jax: 0.10.0
libtpu: 0.0.40
codegen_flags: <defaults>
</compile_context>

<pallas_src>
import functools

import numpy as np
import jax
import jax.numpy as jnp
from jax.experimental import pallas as pl
from jax.experimental.pallas import tpu as pltpu

_MIB = 1024 * 1024


def _round_up(x: int, m: int) -> int:
    return (x + m - 1) // m * m


def _tile_and_pad(total: int, cap: int):
    """Pick a lane tile (multiple of 128, <= cap) and pad `total` up to a multiple of it."""
    cap = max(128, cap - cap % 128)
    t128 = _round_up(max(total, 1), 128)
    tile = min(t128, cap)
    return tile, _round_up(t128, tile)


def _hann_np(n: int) -> np.ndarray:
    # torch.hann_window(n, periodic=True)
    k = np.arange(n, dtype=np.float64)
    return 0.5 - 0.5 * np.cos(2.0 * np.pi * k / n)


def _median_bias(n: int) -> float:
    # scipy.signal._spectral_py._median_bias (Welch "median" averaging bias)
    bias = 1.0
    for k in range(1, (n - 1) // 2 + 1):
        bias += 1.0 / (2 * k + 1) - 1.0 / (2 * k)
    return bias


def _tpu_vmem_capacity_bytes() -> int:
    try:
        return int(pltpu.get_tpu_info().vmem_capacity_bytes)
    except Exception:
        return 64 * _MIB  # conservative (v7x-sized) fallback


# --------------------------- Pallas kernels ---------------------------------

def _welch_psd_kernel(seg_ref, w_ref, out_ref):
    """One frequency tile of the per-segment one-sided periodograms.

    w_ref holds [cos | sin] columns for this tile with the Hann window, the
    "fast" one-sided Welch scaling AND the constant-detrend (column-mean
    subtraction) folded in; segs arrive pre-cast to the weight dtype, so the
    body is exactly one MXU matmul + |.|^2."""
    full = jnp.dot(seg_ref[...], w_ref[...],
                   preferred_element_type=jnp.float32)      # (rows, 2*TF)
    tf = out_ref.shape[-1]
    re = full[:, :tf]
    im = full[:, tf:]
    out_ref[...] = re * re + im * im


def _whiten_fwd_kernel(x_ref, w_ref, h2_ref, rs_ref, acc_ref, *, block_k):
    """rs[:, jtile] = (x @ [cosf|sinf][:, jtile]) * h2[:, jtile], K-tiled over time.

    x is fully VMEM-resident (index_map never changes); the reduction window is
    sliced out in-kernel so only the weight stream is pipelined."""
    k = pl.program_id(1)

    @pl.when(k == 0)
    def _():
        acc_ref[...] = jnp.zeros_like(acc_ref)

    start = pl.multiple_of(k * block_k, 128)
    acc_ref[...] += jnp.dot(x_ref[:, pl.ds(start, block_k)], w_ref[...],
                            preferred_element_type=jnp.float32)

    @pl.when(k == pl.num_programs(1) - 1)
    def _():
        rs_ref[...] = (acc_ref[...] * h2_ref[...]).astype(rs_ref.dtype)


def _whiten_inv_kernel(rs_ref, w_ref, out_ref, acc_ref, *, block_k):
    """y[:, jtile] = rs @ [icos; isin][:, jtile], K-tiled over frequency."""
    k = pl.program_id(1)

    @pl.when(k == 0)
    def _():
        acc_ref[...] = jnp.zeros_like(acc_ref)

    start = pl.multiple_of(k * block_k, 128)
    acc_ref[...] += jnp.dot(rs_ref[:, pl.ds(start, block_k)], w_ref[...],
                            preferred_element_type=jnp.float32)

    @pl.when(k == pl.num_programs(1) - 1)
    def _():
        out_ref[...] = acc_ref[...]


# --------------------------- BatchWhitener ----------------------------------

class BatchWhitenerPallas:
    def __init__(self, kernel_length, sample_rate, inference_sampling_rate,
                 batch_size, fduration, fftlength,
                 highpass=None, lowpass=None, return_whitened=False,
                 dft_dtype=jnp.bfloat16, tile_lanes=None, vmem_limit_bytes=None):
        self.sample_rate = float(sample_rate)
        self.stride_size = int(sample_rate / inference_sampling_rate)
        self.kernel_size = int(kernel_length * sample_rate)
        self.batch_size = int(batch_size)
        self.return_whitened = return_whitened
        strides = (batch_size - 1) * self.stride_size
        self.fsize = int(fduration * sample_rate)
        self.size = strides + self.kernel_size + self.fsize   # samples sent to whitener
        self.pad = self.fsize // 2
        # SpectralDensity(sample_rate, fftlength, overlap=None -> fftlength/2, "median")
        self.nperseg = int(fftlength * sample_rate)
        self.nstride = self.nperseg - int(fftlength / 2 * sample_rate)
        self.nfreq_psd = self.nperseg // 2 + 1
        self.highpass = highpass
        self.lowpass = lowpass
        self.dft_dtype = dft_dtype
        self._dft_itemsize = jnp.dtype(dft_dtype).itemsize

        # ---- generation-aware VMEM budget / tile caps ----
        vmem_cap = _tpu_vmem_capacity_bytes()
        if vmem_limit_bytes is None:
            # 128-MiB parts (v5e/v6e): ~112 MiB scoped; 64-MiB parts (v7x): ~48 MiB.
            vmem_limit_bytes = int(max(32 * _MIB, min(vmem_cap - 16 * _MIB, 112 * _MIB)))
        self._vmem_limit = int(vmem_limit_bytes)
        if tile_lanes is None:
            tile_lanes = 4096 if vmem_cap >= 128 * _MIB else 2048
        # keep multiple of 256 so padded freq counts stay 128-aligned
        self.tile_lanes = max(256, int(tile_lanes) - int(tile_lanes) % 256)

        # ---- data-independent constants, built ONCE (hoisted out of __call__) ----
        self._build_welch_weights()
        self._build_whiten_weights()
        self._build_misc_constants()

    # ---- precomputed DFT weight matrices -----------------------------------
    def _build_welch_weights(self):
        p = self.nperseg
        F = self.nfreq_psd
        cap = self.tile_lanes // 2
        # bound the (p, 2*TF) weight tile so its double buffer fits ~1/3 of the budget
        max_tf = (self._vmem_limit // 3) // max(1, 2 * 2 * p * self._dft_itemsize)
        max_tf = max(128, max_tf - max_tf % 128)
        TF, Fp = _tile_and_pad(F, min(cap, max_tf))
        nft = Fp // TF
        n = np.arange(p, dtype=np.int64)[:, None]
        k = np.arange(Fp, dtype=np.int64)[None, :]
        ang = 2.0 * np.pi * ((n * k) % p).astype(np.float64) / p   # int64: no overflow
        mask = (k < F).astype(np.float64)
        win = _hann_np(p)
        scale = 1.0 / (self.sample_rate * np.sum(win * win))
        # "fast" one-sided PSD: factor of 2 on every bin; Hann window and Welch
        # scaling folded directly into the DFT weights (drops win operand + VPU mul).
        wcol = (win * np.sqrt(2.0 * scale))[:, None]
        cos_m = np.cos(ang) * mask * wcol
        sin_m = np.sin(ang) * mask * wcol
        # Fold detrend="constant": (x - mean(x)) @ W == x @ (W - column_mean(W)).
        cos_m -= cos_m.mean(axis=0, keepdims=True)
        sin_m -= sin_m.mean(axis=0, keepdims=True)
        # Block-interleave [cos_j | sin_j] per frequency tile so |.|^2 stays tile-local.
        fused = np.concatenate(
            [cos_m.reshape(p, nft, TF), sin_m.reshape(p, nft, TF)], axis=2
        ).reshape(p, nft * 2 * TF)
        self._welch_tf = TF
        self._welch_nft = nft
        self.w_welch = jnp.asarray(fused, dtype=self.dft_dtype)

    def _build_whiten_weights(self):
        n_ = self.size
        f = n_ // 2 + 1
        cap = self.tile_lanes
        # forward reduction tile (time) == inverse output tile; pad time to a multiple
        t_time, Np = _tile_and_pad(n_, cap)
        # forward output tile (freq*2) == inverse reduction tile; multiple of 256 so
        # the padded one-sided bin count Fp stays 128-aligned and 2*Fp % t_freq == 0
        f128 = _round_up(f, 128)
        t_freq = min(cap, _round_up(2 * f128, 256))
        t_freq = max(256, t_freq - t_freq % 256)
        Fp = _round_up(f128, t_freq // 2)

        ni = np.arange(Np, dtype=np.int64)
        ki = np.arange(Fp, dtype=np.int64)
        ang = 2.0 * np.pi * ((ni[:, None] * ki[None, :]) % n_).astype(np.float64) / n_
        fmask = (ki[None, :] < f).astype(np.float64)
        cosf = np.cos(ang) * fmask                     #  Re rfft weights
        sinf = np.sin(ang) * fmask                     # -Im rfft weights
        w_fwd = np.concatenate([cosf, sinf], axis=1)   # (Np, 2*Fp)
        # inverse rfft weights: 1/N at DC and (even-N) Nyquist, 2/N elsewhere
        nyq = (ki == f - 1) & (n_ % 2 == 0)
        wk = np.where((ki == 0) | nyq, 1.0, 2.0) / n_
        ang_i = 2.0 * np.pi * ((ki[:, None] * ni[None, :]) % n_).astype(np.float64) / n_
        imask = (ki[:, None] < f).astype(np.float64)
        icos = np.cos(ang_i) * wk[:, None] * imask
        isin = np.sin(ang_i) * wk[:, None] * imask
        w_inv = np.concatenate([icos, isin], axis=0)   # (2*Fp, Np)

        self._np_w = Np
        self._fp_w = Fp
        self._f_w = f
        self._t_time = t_time
        self._t_freq = t_freq
        # TODO(synk): for production sizes (Np ~ 4k-40k) a factorized (Cooley-Tukey)
        # FFT-as-matmul would cut weight bytes from O(N*F) to O(N*(N1+N2)); dense DFT
        # kept here. fp8 (v7x) / int8 (v5e/v6e) weight variants also unimplemented.
        self.w_fwd = jnp.asarray(w_fwd, dtype=self.dft_dtype)
        self.w_inv = jnp.asarray(w_inv, dtype=self.dft_dtype)

    def _build_misc_constants(self):
        n_, f, fs = self.size, self._f_w, self.sample_rate
        # edge taper (torch.hann_window(2*pad)) shared by X and the filter truncation
        self.tw = jnp.asarray(_hann_np(2 * self.pad), dtype=jnp.float32)
        freqs_x = np.arange(f, dtype=np.float64) * (fs / n_)
        self.freqs_x = jnp.asarray(freqs_x, dtype=jnp.float32)
        self.freqs_psd = jnp.asarray(
            np.arange(self.nfreq_psd, dtype=np.float64) * (fs / self.nperseg),
            dtype=jnp.float32)
        mask = np.ones(f, dtype=np.float64)
        if self.highpass is not None:
            mask[freqs_x < self.highpass] = 0.0
        if self.lowpass is not None:
            mask[freqs_x > self.lowpass] = 0.0
        self.freq_mask = jnp.asarray(mask, dtype=jnp.float32)

    # ------------------------- pallas_call wrappers --------------------------
    def _welch_periodograms(self, segs):
        rp, p = segs.shape
        TF, nft = self._welch_tf, self._welch_nft
        return pl.pallas_call(
            _welch_psd_kernel,
            out_shape=jax.ShapeDtypeStruct((rp, nft * TF), jnp.float32),
            grid_spec=pltpu.PrefetchScalarGridSpec(
                num_scalar_prefetch=0,
                grid=(nft,),
                in_specs=[
                    # segs fully resident (index never changes -> fetched once)
                    pl.BlockSpec((rp, p), lambda j: (0, 0)),
                    pl.BlockSpec((p, 2 * TF), lambda j: (0, j)),
                ],
                out_specs=pl.BlockSpec((rp, TF), lambda j: (0, j)),
            ),
            compiler_params=pltpu.CompilerParams(
                dimension_semantics=("parallel",),
                vmem_limit_bytes=self._vmem_limit),
        )(segs, self.w_welch)

    def _whiten_forward(self, xw, h2):
        cp, Np = xw.shape
        tn, tk = self._t_freq, self._t_time
        f2 = 2 * self._fp_w
        kernel = functools.partial(_whiten_fwd_kernel, block_k=tk)
        return pl.pallas_call(
            kernel,
            out_shape=jax.ShapeDtypeStruct((cp, f2), self.dft_dtype),
            grid_spec=pltpu.PrefetchScalarGridSpec(
                num_scalar_prefetch=0,
                grid=(f2 // tn, Np // tk),
                in_specs=[
                    # x fully resident, sliced per reduction step inside the kernel
                    pl.BlockSpec((cp, Np), lambda j, k: (0, 0)),
                    pl.BlockSpec((tk, tn), lambda j, k: (k, j)),
                    pl.BlockSpec((cp, tn), lambda j, k: (0, j)),
                ],
                out_specs=pl.BlockSpec((cp, tn), lambda j, k: (0, j)),
                scratch_shapes=[pltpu.VMEM((cp, tn), jnp.float32)],
            ),
            compiler_params=pltpu.CompilerParams(
                dimension_semantics=("parallel", "arbitrary"),
                vmem_limit_bytes=self._vmem_limit),
        )(xw, self.w_fwd, h2)

    def _whiten_inverse(self, rs):
        cp, f2 = rs.shape
        Np = self._np_w
        tn, tk = self._t_time, self._t_freq
        kernel = functools.partial(_whiten_inv_kernel, block_k=tk)
        return pl.pallas_call(
            kernel,
            out_shape=jax.ShapeDtypeStruct((cp, Np), jnp.float32),
            grid_spec=pltpu.PrefetchScalarGridSpec(
                num_scalar_prefetch=0,
                grid=(Np // tn, f2 // tk),
                in_specs=[
                    # rs fully resident (already in weight dtype from the forward pass)
                    pl.BlockSpec((cp, f2), lambda j, k: (0, 0)),
                    pl.BlockSpec((tk, tn), lambda j, k: (k, j)),
                ],
                out_specs=pl.BlockSpec((cp, tn), lambda j, k: (0, j)),
                scratch_shapes=[pltpu.VMEM((cp, tn), jnp.float32)],
            ),
            compiler_params=pltpu.CompilerParams(
                dimension_semantics=("parallel", "arbitrary"),
                vmem_limit_bytes=self._vmem_limit),
        )(rs, self.w_inv)

    # ------------------------------ forward -----------------------------------
    def __call__(self, x):
        if x.ndim != 2:
            raise ValueError(f"Expected (channels, time) input, got shape {x.shape}")
        num_channels, total = x.shape
        fs = self.sample_rate
        n_ = self.size
        f = self._f_w
        pad = self.pad
        tw = self.tw

        # -------- PsdEstimator: split background / analysis segment ---------
        bg_len = total - n_
        background = x[:, :bg_len]
        X = x[:, bg_len:]
        # TODO(synk): PyTorch promotes to float64 here; TPU Pallas has no f64, kept f32.

        # -------- SpectralDensity (Welch, median average, "fast") -----------
        nseg = (bg_len - self.nperseg) // self.nstride + 1
        # TODO(synk): overlapping Welch segments are materialized with a JAX gather; a
        # pl.Element-offset index_map reading windows straight from HBM would halve
        # the PSD-path HBM traffic.
        idx = (jnp.arange(nseg)[:, None] * self.nstride
               + jnp.arange(self.nperseg)[None, :])
        segs = background[:, idx].reshape(num_channels * nseg, self.nperseg)
        rp = _round_up(num_channels * nseg, 8)
        segs = jnp.pad(segs, ((0, rp - num_channels * nseg), (0, 0)))
        segs = segs.astype(self.dft_dtype)   # pre-cast once (detrend lives in weights)

        pgram = self._welch_periodograms(segs)
        pgram = pgram[:num_channels * nseg, :self.nfreq_psd]
        pgram = pgram.reshape(num_channels, nseg, self.nfreq_psd)
        # TODO(synk): median (sort) across Welch segments done in plain JAX.
        # scipy convention: the median periodogram is DIVIDED by the bias.
        psd = jnp.median(pgram, axis=1) / _median_bias(nseg)    # (C, F_psd)

        # -------- Whiten: build per-channel frequency response --------------
        psd_i = jax.vmap(lambda s: jnp.interp(self.freqs_x, self.freqs_psd, s))(psd)
        inv_asd = 1.0 / jnp.sqrt(jnp.maximum(psd_i, 1e-30))
        inv_asd = inv_asd * self.freq_mask[None, :]             # highpass / lowpass

        # Truncate the whitening filter's impulse response to fduration
        # (small filter-construction glue; tiny jnp.fft on (C, n_) arrays).
        q = jnp.fft.irfft(inv_asd, n=n_, axis=-1)
        q_left = q[:, :pad] * tw[pad:]
        q_right = q[:, -pad:] * tw[:pad]
        q = jnp.concatenate(
            [q_left, jnp.zeros((num_channels, n_ - 2 * pad), q.dtype), q_right], axis=-1)
        # q is constructed circularly symmetric, so its rfft is real; .real drops fp noise only.
        h = jnp.fft.rfft(q, axis=-1).real.astype(jnp.float32)
        h = h * jnp.sqrt(2.0 / fs)                   # unit-variance whitening scale

        # Taper the edges of X over fduration to suppress wrap-around.
        Xw = X.astype(jnp.float32)
        Xw = Xw.at[:, :pad].multiply(tw[:pad])
        Xw = Xw.at[:, -pad:].multiply(tw[pad:])

        cp = _round_up(num_channels, 8)
        Np, Fp = self._np_w, self._fp_w
        # TODO(synk): cp=round_up(C,8) keeps the MXU M dim thin; batching multiple
        # analysis windows/streams into the leading dim would reuse the weight stream.
        Xw = jnp.pad(Xw, ((0, cp - num_channels), (0, Np - n_))).astype(self.dft_dtype)
        h_p = jnp.pad(h, ((0, cp - num_channels), (0, Fp - f)))
        h2 = jnp.concatenate([h_p, h_p], axis=1)     # matches fused [cos | sin] layout

        rs = self._whiten_forward(Xw, h2)            # (cp, 2*Fp) whitened spectrum
        y = self._whiten_inverse(rs)                 # (cp, Np)  time domain
        whitened = y[:num_channels, pad:n_ - pad]    # (C, strides + kernel_size)

        # -------- unfold_windows(...).reshape(-1, C, kernel_size) -----------
        widx = (jnp.arange(self.batch_size)[:, None] * self.stride_size
                + jnp.arange(self.kernel_size)[None, :])
        out = jnp.transpose(whitened[:, widx], (1, 0, 2))        # (B, C, K)
        if self.return_whitened:
            return out, whitened
        return out


if __name__ == "__main__":
    sample_rate = 256.0
    kernel_length = 2.0              # kernel_size = 512
    inference_sampling_rate = 64.0   # stride_size = 4
    batch_size = 8
    fduration = 1.0                  # fsize = 256, crop pad = 128
    fftlength = 1.0                  # nperseg = 256
    highpass = 8.0                   # highpass set -> fast PSD path in reference

    whitener = BatchWhitenerPallas(
        kernel_length=kernel_length,
        sample_rate=sample_rate,
        inference_sampling_rate=inference_sampling_rate,
        batch_size=batch_size,
        fduration=fduration,
        fftlength=fftlength,
        highpass=highpass,
        dft_dtype=jnp.bfloat16,   # bf16 DFT weights; use jnp.float32 for tighter tolerance
        tile_lanes=256,           # small cap so the toy shapes still exercise multi-step grids
    )

    num_channels = 2
    psd_seconds = 4.0
    total = int(psd_seconds * sample_rate) + whitener.size   # 1024 background + 796

    key = jax.random.PRNGKey(0)
    x = jax.random.normal(key, (num_channels, total), dtype=jnp.float32)

    out = whitener(x)
    out = jax.block_until_ready(out)
    assert out.shape == (batch_size, num_channels, whitener.kernel_size), out.shape
    assert bool(jnp.all(jnp.isfinite(out)))
    print("KERNEL_OK")
</pallas_src>

<mosaic_0001>
module attributes {stable_mosaic.version = 11 : i64} {
  func.func @_welch_psd_kernel(%arg0: i32, %arg1: memref<16x256xbf16, #tpu.memory_space<vmem>>, %arg2: memref<256x256xbf16, #tpu.memory_space<vmem>>, %arg3: memref<16x128xf32, #tpu.memory_space<vmem>>) attributes {dimension_semantics = [#tpu.dimension_semantics<parallel>], iteration_bounds = array<i64: 2>, scalar_prefetch = 0 : i64, scratch_operands = 0 : i64, tpu.core_type = #tpu.core_type<tc>, window_params = [{pipeline_mode = #tpu.pipeline_mode<synchronous>, transform_indices = @transform_0, window_bounds = array<i64: 16, 256>}, {transform_indices = @transform_1, window_bounds = array<i64: 256, 256>}, {transform_indices = @transform_2, window_bounds = array<i64: 16, 128>}]} {
    %c0 = arith.constant 0 : index
    %c0_0 = arith.constant 0 : index
    %0 = vector.load %arg1[%c0, %c0_0] : memref<16x256xbf16, #tpu.memory_space<vmem>>, vector<16x256xbf16>
    %c0_1 = arith.constant 0 : index
    %c0_2 = arith.constant 0 : index
    %1 = vector.load %arg2[%c0_1, %c0_2] : memref<256x256xbf16, #tpu.memory_space<vmem>>, vector<256x256xbf16>
    %cst = arith.constant dense<0.000000e+00> : vector<16x256xf32>
    %2 = tpu.matmul %0, %1, %cst {dimension_numbers = #tpu.dot_dimension_numbers<[1], [0], [0], [1], [0, 0, 1, 1], [], []>} : vector<16x256xbf16>, vector<256x256xbf16>, vector<16x256xf32> -> vector<16x256xf32>
    %3 = vector.extract_strided_slice %2 {offsets = [0, 0], sizes = [16, 128], strides = [1, 1]} : vector<16x256xf32> to vector<16x128xf32>
    %4 = vector.extract_strided_slice %2 {offsets = [0, 128], sizes = [16, 128], strides = [1, 1]} : vector<16x256xf32> to vector<16x128xf32>
    %5 = arith.mulf %3, %3 : vector<16x128xf32>
    %6 = arith.mulf %4, %4 : vector<16x128xf32>
    %7 = arith.addf %5, %6 : vector<16x128xf32>
    %c0_3 = arith.constant 0 : index
    %c0_4 = arith.constant 0 : index
    %8 = vector.load %arg3[%c0_3, %c0_4] : memref<16x128xf32, #tpu.memory_space<vmem>>, vector<16x128xf32>
    tpu.vector_store %arg3[%c0_3, %c0_4], %7 {strides = array<i32>} : memref<16x128xf32, #tpu.memory_space<vmem>>, vector<16x128xf32>,
    return
  }
  func.func @transform_0(%arg0: i32) -> (i32, i32) {
    %c0_i32 = arith.constant 0 : i32
    %c0_i32_0 = arith.constant 0 : i32
    %c0_i32_1 = arith.constant 0 : i32
    return %c0_i32, %c0_i32_0 : i32, i32
  }
  func.func @transform_1(%arg0: i32) -> (i32, i32) {
    %c0_i32 = arith.constant 0 : i32
    %c0_i32_0 = arith.constant 0 : i32
    return %c0_i32, %arg0 : i32, i32
  }
  func.func @transform_2(%arg0: i32) -> (i32, i32) {
    %c0_i32 = arith.constant 0 : i32
    %c0_i32_0 = arith.constant 0 : i32
    return %c0_i32, %arg0 : i32, i32
  }
}

</mosaic_0001>

<bundles_post_ra>
// kernel: tpu_custom_call.1
= control target key start
LH: loop header
LB: loop body
LE: loop exit
PB: predicated region body
PF: predicated region fallthrough
CT: control target
= control target key end

     0   :  { %7 = vsyncpa [#allocation3], 0  ;;  %s1165_s0 = inlined_call_operand.hbm [shape: bf16[16,256], index: 0, kind: input, shape index: {}]   ;;  %s1166_s1 = inlined_call_operand.hbm [shape: bf16[256,512], index: 1, kind: input, shape index: {}]   ;;  %s1167_s2 = inlined_call_operand.hbm [shape: f32[16,256], index: 2, kind: output, shape index: {}]  }
   0x1   :  { %8 = vsyncpa [#allocation6], 0 }
   0x2   :  { %10 = vsyncpa [#allocation6 + $0x1], 0 }
   0x3   :  { %11 = vsyncpa [#allocation4], 0 }
   0x4   :  { %13 = vsyncpa [#allocation4 + $0x1], 0  ;;  %s953_s9 = smov 0   ;;  %s955_s10 = smov 0  }
   0x5   :  { %s957_s11 = smov 0   ;;  %s959_s12 = smov 0  }
   0x6 LB: > { %s974_s13 = sadd.s32 4294967295, %s929_s12   ;;  %s550_s14 = sadd.s32 4294967294, %s929_s12   ;;  %s929_s12 = sphi %s959_s12, %s1177_s12   ;;  %s925_s11 = sphi %s957_s11, %s1176_s11   ;;  %s921_s10 = sphi %s955_s10, %s1175_s10   ;;  %s917_s9 = sphi %s953_s9, %s1174_s9  }
   0x7   : > { %p60_p0 = scmp.ne.s32.totalorder %s921_s10, %s917_s9  ;;  %p61_p1 = scmp.eq.s32.totalorder %s974_s13, 0 }
   0x8   : > { %p84_p2 = scmp.eq.s32.totalorder %s974_s13, 1  ;;  %p90_p3 = scmp.eq.s32.totalorder %s550_s14, 1 }
   0x9   : > { %p983_p4 = por %p61_p1, %p60_p0  ;;  %p551_p5 = scmp.ge.s32.totalorder %s929_s12, 1 }
   0xa   : > { %p988_p6 = por %p90_p3, %p60_p0  ;;  %p97_p7 = scmp.lt.s32.totalorder %s929_s12, 3 }
   0xb   : > { %s108_s19 = sshll.u32 %s1165_s0, 4  ;;  %s931_s21 = smov [#allocation2]   ;;  %s109_s19 = int_to_ptr.hbm [resolvable:$true] %s108_s19 }
   0xc   : > { %p996_p8 = pnand %p551_p5, %p97_p7  ;;  %s110_s22 = sshll.u32 %s931_s21, 4  ;;  %s111_s22 = int_to_ptr.vmem [resolvable:$true] %s110_s22 }
   0xd   : > { %s1006_s23 = sadd.s32 1, %s929_s12   ;;  %s932_s24 = smov 128  }
   0xe   : > { %p744_p9 = pneg %p996_p8  ;;  %s933_s25 = smov 8  }
   0xf   : > { %s44_s26 = ssub.s32 %s929_s12, %s1006_s23  ;;  %s47_s27 = sadd.s32 1, %s925_s11 }
  0x10   : > { %p745_p10 = pnand %p744_p9, %p61_p1  ;;  %p45_p12 = scmp.eq.s32.totalorder %s44_s26, 0 }
  0x11   : > { %p54_p13 = scmp.ne.s32.totalorder %s925_s11, %s921_s10  ;;  %p55_p0 = scmp.eq.s32.totalorder %s929_s12, 0 }
  0x12   : > { %747 = dma.hbm_to_vmem [thread:$0]  (!%p745_p10), %s109_s19, 256, %s111_s22, [#allocation3], %s932_s24, %s932_s24, %s933_s25  }
  0x13   : > { %p757_p3 = scmp.lt.s32.totalorder %s929_s12, 2  ;;  %p56_p5 = por %p55_p0, %p54_p13 }
  0x14   : > { %s1019_s28 = scalar_select %p45_p12, %s925_s11, %s47_s27  }
  0x15   : > { %p1023_p7 = por %p84_p2, %p54_p13  ;;  %s124_s30 = sand.u32 1, %s925_s11  }
  0x16   : > { %s701_s3 = sshll.u32 %s929_s12, 3  ;;  %s554_s4 = sshll.u32 %s124_s30, 8 }
  0x17   : > { %s133_s7 = scalar_lea.hbm %s1166_s1, %s701_s3  ;;  %s128_s14 = scalar_lea.vmem [#allocation5], %s554_s4 }
  0x18   : > { %s134_s8 = sshll.u32 %s133_s7, 4  ;;  %s136_s17 = sshll.u32 %s128_s14, 4  ;;  %s135_s8 = int_to_ptr.hbm [resolvable:$true] %s134_s8  ;;  %s137_s17 = int_to_ptr.vmem [resolvable:$true] %s136_s17 }
  0x19   : > { %p1034_p9 = pnand %p757_p3, %p56_p5  ;;  %s125_s19 = scalar_lea.sflag [#allocation6], %s124_s30 }
  0x1a   : > { %s829_s21 = sshra.s32 %s135_s8, 4  ;;  %s836_s3 = scalar_lea.hbm %s1166_s1, 512  ;;  %s830_s21 = int_to_ptr.hbm [resolvable:$true] %s829_s21 }
  0x1b   : > { %s831_s22 = scalar_lea.hbm %s830_s21, 256  ;;  %p833_p10 = pneg %p1034_p9 }
  0x1c   : > { %p832_p2 = scmp.ne.s32.totalorder %s830_s21, %s831_s22  ;;  %p837_p0 = scmp.lt.s32.totalorder %s830_s21, %s1166_s1 }
  0x1d   : > { %p838_p3 = scmp.lt.s32.totalorder %s836_s3, %s831_s22 }
  0x1e   : > { %p834_p12 = pnand %p833_p10, %p832_p2 }
  0x1f   : > { %p839_p5 = por %p838_p3, %p837_p0 }
  0x20   : > { %p835_p13 = pneg %p834_p12 }
  0x22   : > { %p840_p11 = pnand %p839_p5, %p835_p13 }
  0x24   : > { %843 = shalt.err (!%p840_p11)
}
  0x25   : > { %s934_s30 = smov 256   ;;  %148 = sbr.rel (%p996_p8) target bundleno = 235 (0xeb), region = 28 }
  0x26   : > { %751 = dma.hbm_to_vmem [thread:$0]  (!%p1034_p9), %s135_s8, 4096, %s137_s17, %s125_s19, %s934_s30, %s932_s24, %s933_s25  }
  0x2a   : > { %904 = dma.done.wait (%p61_p1), [#allocation3], 256  }
  0x2b   : > { %906 = vsyncadd (%p61_p1), [#allocation3], 4294967040  ;;  %s1057_s6 = sand.u32 1, %s921_s10  }
  0x2c   : > { %s559_s7 = sshll.u32 %s1057_s6, 8  ;;  %s156_s14 = scalar_lea.sflag [#allocation6], %s1057_s6 }
  0x2d   : > { %s1061_s18 = scalar_lea.vmem [#allocation5], %s559_s7 }
  0x2e   : > { %908 = dma.done.wait (%p983_p4), %s156_s14, 4096  }
  0x2f   : > { %910 = vsyncadd (%p983_p4), %s156_s14, 4294963200  ;;  %v627_v0 = vld [vmem:[%s1061_s18 + $0x70] sm:$0xf]  ;;  %v719_v1 = vld [vmem:[%s1061_s18 + $0x74] sm:$0xf0]  ;;  %s560_s15 = sshll.u32 %s1057_s6, 4 }
  0x30   : > { %v691_v2 = vld [vmem:[%s1061_s18 + $0xf0] sm:$0xf]  ;;  %v628_v3 = vor.u32 %v719_v1, %v627_v0  ;;  %v735_v4 = vld [vmem:[%s1061_s18 + $0xf4] sm:$0xf0]  ;;  %v718_v5 = vld [vmem:[%s1061_s18 + $0x74] sm:$0xf] }
  0x31   : > { %v629_v6 = vld [vmem:[%s1061_s18 + $0x78] sm:$0xf0]  ;;  %v692_v7 = vor.u32 %v735_v4, %v691_v2  ;;  %v734_v9 = vld [vmem:[%s1061_s18 + $0xf4] sm:$0xf]  ;;  %v619_v11 = vld [vmem:[%s1061_s18 + $0x60] sm:$0xf] }
  0x32   : > { %v632_v8 = vor.u32 %v718_v5, %v629_v6  ;;  %v693_v10 = vld [vmem:[%s1061_s18 + $0xf8] sm:$0xf0]  ;;  %386 = vmatpush.bf16.msra.mxu0 %v628_v3  ;;  %v717_v13 = vld [vmem:[%s1061_s18 + $0x64] sm:$0xf0]  ;;  %v683_v14 = vld [vmem:[%s1061_s18 + $0xe0] sm:$0xf] }
  0x33   : > { %v696_v12 = vor.u32 %v734_v9, %v693_v10  ;;  %v733_v15 = vld [vmem:[%s1061_s18 + $0xe4] sm:$0xf0]  ;;  %400 = vmatpush.bf16.msra.mxu1 %v692_v7  ;;  %v620_v16 = vor.u32 %v717_v13, %v619_v11  ;;  %v716_v18 = vld [vmem:[%s1061_s18 + $0x64] sm:$0xf]  ;;  %v621_v19 = vld [vmem:[%s1061_s18 + $0x68] sm:$0xf0] }
  0x34   : > { %414 = vmatpush.bf16.msra.mxu2 %v632_v8  ;;  %v684_v17 = vor.u32 %v733_v15, %v683_v14  ;;  %v732_v20 = vld [vmem:[%s1061_s18 + $0xe4] sm:$0xf]  ;;  %v624_v21 = vor.u32 %v716_v18, %v621_v19  ;;  %v685_v22 = vld [vmem:[%s1061_s18 + $0xe8] sm:$0xf0]  ;;  %v611_v23 = vld [vmem:[%s1061_s18 + $0x50] sm:$0xf] }
  0x35   : > { %428 = vmatpush.bf16.msra.mxu3 %v696_v12  ;;  %v715_v24 = vld [vmem:[%s1061_s18 + $0x54] sm:$0xf0]  ;;  %v688_v25 = vor.u32 %v732_v20, %v685_v22  ;;  %v675_v26 = vld [vmem:[%s1061_s18 + $0xd0] sm:$0xf]  ;;  %v714_v28 = vld [vmem:[%s1061_s18 + $0x54] sm:$0xf] }
  0x36   : > { %v731_v27 = vld [vmem:[%s1061_s18 + $0xd4] sm:$0xf0]  ;;  %387 = vmatpush.bf16.msra.mxu0 %v620_v16  ;;  %v612_v29 = vor.u32 %v715_v24, %v611_v23  ;;  %v613_v30 = vld [vmem:[%s1061_s18 + $0x58] sm:$0xf0]  ;;  %v730_v31 = vld [vmem:[%s1061_s18 + $0xd4] sm:$0xf] }
  0x37   : > { %v677_v32 = vld [vmem:[%s1061_s18 + $0xd8] sm:$0xf0]  ;;  %401 = vmatpush.bf16.msra.mxu1 %v684_v17  ;;  %v676_v33 = vor.u32 %v731_v27, %v675_v26  ;;  %v616_v34 = vor.u32 %v714_v28, %v613_v30  ;;  %v603_v35 = vld [vmem:[%s1061_s18 + $0x40] sm:$0xf]  ;;  %v713_v36 = vld [vmem:[%s1061_s18 + $0x44] sm:$0xf0] }
  0x38   : > { %415 = vmatpush.bf16.msra.mxu2 %v624_v21  ;;  %v667_v37 = vld [vmem:[%s1061_s18 + $0xc0] sm:$0xf]  ;;  %v680_v38 = vor.u32 %v730_v31, %v677_v32  ;;  %v729_v39 = vld [vmem:[%s1061_s18 + $0xc4] sm:$0xf0]  ;;  %v712_v40 = vld [vmem:[%s1061_s18 + $0x44] sm:$0xf]  ;;  %v604_v44 = vor.u32 %v713_v36, %v603_v35 }
  0x39   : > { %429 = vmatpush.bf16.msra.mxu3 %v688_v25  ;;  %v605_v41 = vld [vmem:[%s1061_s18 + $0x48] sm:$0xf0]  ;;  %v728_v42 = vld [vmem:[%s1061_s18 + $0xc4] sm:$0xf]  ;;  %v668_v45 = vor.u32 %v729_v39, %v667_v37  ;;  %v595_v47 = vld [vmem:[%s1061_s18 + $0x30] sm:$0xf] }
  0x3a   : > { %v669_v43 = vld [vmem:[%s1061_s18 + $0xc8] sm:$0xf0]  ;;  %388 = vmatpush.bf16.msra.mxu0 %v612_v29  ;;  %v608_v46 = vor.u32 %v712_v40, %v605_v41  ;;  %v711_v48 = vld [vmem:[%s1061_s18 + $0x34] sm:$0xf0]  ;;  %v659_v49 = vld [vmem:[%s1061_s18 + $0xb0] sm:$0xf] }
  0x3b   : > { %402 = vmatpush.bf16.msra.mxu1 %v676_v33  ;;  %v672_v50 = vor.u32 %v728_v42, %v669_v43  ;;  %v727_v51 = vld [vmem:[%s1061_s18 + $0xb4] sm:$0xf0]  ;;  %v710_v52 = vld [vmem:[%s1061_s18 + $0x34] sm:$0xf]  ;;  %v597_v53 = vld [vmem:[%s1061_s18 + $0x38] sm:$0xf0]  ;;  %v596_v56 = vor.u32 %v711_v48, %v595_v47 }
  0x3c   : > { %416 = vmatpush.bf16.msra.mxu2 %v616_v34  ;;  %v726_v54 = vld [vmem:[%s1061_s18 + $0xb4] sm:$0xf]  ;;  %v661_v55 = vld [vmem:[%s1061_s18 + $0xb8] sm:$0xf0]  ;;  %v660_v57 = vor.u32 %v727_v51, %v659_v49  ;;  %v600_v58 = vor.u32 %v710_v52, %v597_v53  ;;  %v587_v59 = vld [vmem:[%s1061_s18 + $0x20] sm:$0xf] }
  0x3d   : > { %430 = vmatpush.bf16.msra.mxu3 %v680_v38  ;;  %v709_v60 = vld [vmem:[%s1061_s18 + $0x24] sm:$0xf0]  ;;  %v651_v61 = vld [vmem:[%s1061_s18 + $0xa0] sm:$0xf]  ;;  %v664_v62 = vor.u32 %v726_v54, %v661_v55  ;;  %v708_v0 = vld [vmem:[%s1061_s18 + $0x24] sm:$0xf] }
  0x3e   : > { %389 = vmatpush.bf16.msra.mxu0 %v604_v44  ;;  %v725_v63 = vld [vmem:[%s1061_s18 + $0xa4] sm:$0xf0]  ;;  %v589_v1 = vld [vmem:[%s1061_s18 + $0x28] sm:$0xf0]  ;;  %v724_v2 = vld [vmem:[%s1061_s18 + $0xa4] sm:$0xf]  ;;  %v588_v4 = vor.u32 %v709_v60, %v587_v59 }
  0x3f   : > { %403 = vmatpush.bf16.msra.mxu1 %v668_v45  ;;  %v653_v3 = vld [vmem:[%s1061_s18 + $0xa8] sm:$0xf0]  ;;  %v652_v5 = vor.u32 %v725_v63, %v651_v61  ;;  %v592_v6 = vor.u32 %v708_v0, %v589_v1  ;;  %v579_v7 = vld [vmem:[%s1061_s18 + $0x10] sm:$0xf]  ;;  %v707_v8 = vld [vmem:[%s1061_s18 + $0x14] sm:$0xf0] }
  0x40   : > { %417 = vmatpush.bf16.msra.mxu2 %v608_v46  ;;  %v643_v9 = vld [vmem:[%s1061_s18 + $0x90] sm:$0xf]  ;;  %v656_v10 = vor.u32 %v724_v2, %v653_v3  ;;  %v723_v11 = vld [vmem:[%s1061_s18 + $0x94] sm:$0xf0]  ;;  %v706_v12 = vld [vmem:[%s1061_s18 + $0x14] sm:$0xf]  ;;  %v580_v16 = vor.u32 %v707_v8, %v579_v7 }
  0x41   : > { %431 = vmatpush.bf16.msra.mxu3 %v672_v50  ;;  %v581_v13 = vld [vmem:[%s1061_s18 + $0x18] sm:$0xf0]  ;;  %v722_v14 = vld [vmem:[%s1061_s18 + $0x94] sm:$0xf]  ;;  %v644_v17 = vor.u32 %v723_v11, %v643_v9  ;;  %v571_v19 = vld [vmem:[%s1061_s18] sm:$0xf] }
  0x42   : > { %390 = vmatpush.bf16.msra.mxu0 %v596_v56  ;;  %v645_v15 = vld [vmem:[%s1061_s18 + $0x98] sm:$0xf0]  ;;  %v584_v18 = vor.u32 %v706_v12, %v581_v13  ;;  %v705_v20 = vld [vmem:[%s1061_s18 + $0x4] sm:$0xf0]  ;;  %v635_v21 = vld [vmem:[%s1061_s18 + $0x80] sm:$0xf] }
  0x43   : > { %404 = vmatpush.bf16.msra.mxu1 %v660_v57  ;;  %v648_v22 = vor.u32 %v722_v14, %v645_v15  ;;  %v721_v23 = vld [vmem:[%s1061_s18 + $0x84] sm:$0xf0]  ;;  %v704_v24 = vld [vmem:[%s1061_s18 + $0x4] sm:$0xf]  ;;  %v573_v25 = vld [vmem:[%s1061_s18 + $0x8] sm:$0xf0]  ;;  %v572_v28 = vor.u32 %v705_v20, %v571_v19 }
  0x44   : > { %418 = vmatpush.bf16.msra.mxu2 %v600_v58  ;;  %v720_v26 = vld [vmem:[%s1061_s18 + $0x84] sm:$0xf]  ;;  %v637_v27 = vld [vmem:[%s1061_s18 + $0x88] sm:$0xf0]  ;;  %v563_v29 = vld [vmem:[#allocation2] sm:$0xf]  ;;  %v636_v31 = vor.u32 %v721_v23, %v635_v21  ;;  %v576_v32 = vor.u32 %v704_v24, %v573_v25 }
  0x45   : > { %432 = vmatpush.bf16.msra.mxu3 %v664_v62  ;;  %v703_v30 = vld [vmem:[#allocation2 + $0x4] sm:$0xf0]  ;;  %v702_v33 = vld [vmem:[#allocation2 + $0x4] sm:$0xf]  ;;  %v565_v34 = vld [vmem:[#allocation2 + $0x8] sm:$0xf0]  ;;  %v640_v35 = vor.u32 %v720_v26, %v637_v27 }
  0x46   : > { %391 = vmatpush.bf16.msra.mxu0 %v588_v4  ;;  %v564_v36 = vor.u32 %v703_v30, %v563_v29  ;;  %v568_v37 = vor.u32 %v702_v33, %v565_v34  ;;  %s698_s20 = sshll.u32 %s974_s13, 3  ;;  %s180_s17 = scalar_lea.vmem [#allocation7], %s560_s15 }
  0x47   : > { %405 = vmatpush.bf16.msra.mxu1 %v652_v5  ;;  %s461_s8 = scalar_lea.hbm %s1167_s2, %s698_s20  ;;  %s462_s19 = sshll.u32 %s180_s17, 4  ;;  %s463_s19 = int_to_ptr.vmem [resolvable:$true] %s462_s19 }
  0x48   : > { %419 = vmatpush.bf16.msra.mxu2 %v592_v6  ;;  %s464_s21 = sshll.u32 %s461_s8, 4  ;;  %s451_s13 = scalar_lea.sflag [#allocation4], %s1057_s6  ;;  %s465_s21 = int_to_ptr.hbm [resolvable:$true] %s464_s21 }
  0x49   : > { %433 = vmatpush.bf16.msra.mxu3 %v656_v10  ;;  %s873_s22 = sshra.s32 %s465_s21, 4  ;;  %s879_s4 = scalar_lea.hbm %s1167_s2, 32  ;;  %s874_s22 = int_to_ptr.hbm [resolvable:$true] %s873_s22 }
  0x4a   : > { %392 = vmatpush.bf16.msra.mxu0 %v580_v16  ;;  %s875_s26 = scalar_lea.hbm %s874_s22, 16  ;;  %p880_p11 = scmp.lt.s32.totalorder %s874_s22, %s1167_s2 }
  0x4b   : > { %406 = vmatpush.bf16.msra.mxu1 %v644_v17  ;;  %p876_p1 = scmp.ne.s32.totalorder %s874_s22, %s875_s26  ;;  %p881_p9 = scmp.lt.s32.totalorder %s879_s4, %s875_s26 }
  0x4c   : > { %420 = vmatpush.bf16.msra.mxu2 %v584_v18 }
  0x4d   : > { %434 = vmatpush.bf16.msra.mxu3 %v648_v22  ;;  %p877_p4 = pnand %p876_p1, %p1023_p7  ;;  %p882_p2 = por %p881_p9, %p880_p11 }
  0x4e   : > { %393 = vmatpush.bf16.msra.mxu0 %v572_v28 }
  0x4f   : > { %407 = vmatpush.bf16.msra.mxu1 %v636_v31  ;;  %p878_p8 = pneg %p877_p4 }
  0x50   : > { %421 = vmatpush.bf16.msra.mxu2 %v576_v32 }
  0x51   : > { %435 = vmatpush.bf16.msra.mxu3 %v640_v35  ;;  %394 = vmatmul.bf16.vlgmr.msra.gmra.mxu0 %v564_v36  ;;  %p883_p10 = pnand %p882_p2, %p878_p8 }
  0x52   : > { %408 = vmatmul.bf16.vlgmr.msra.gmra.mxu1 %v568_v37 }
  0x53   : > { %422 = vmatmul.bf16.vlgmr.msra.gmra.mxu2 %v564_v36 }
  0x54   : > { %436 = vmatmul.bf16.vlgmr.msra.gmra.mxu3 %v568_v37 }
  0xce   : > { %v395_v38 = vpop.f32.mrf.mxu0 }
  0xcf   : > { %v409_v39 = vpop.f32.mrf.mxu1 }
  0xd0   : > { %v410_v40 = vadd.f32 %v409_v39, %v395_v38 }
  0xd2   : > { %v442_v43 = vmul.f32 %v410_v40, %v410_v40 }
  0xd6   : > { %v423_v41 = vpop.f32.mrf.mxu2  ;;  %v397_v46 = vpop.f32.mrf.mxu0 }
  0xd7   : > { %v437_v42 = vpop.f32.mrf.mxu3  ;;  %v411_v47 = vpop.f32.mrf.mxu1 }
  0xd8   : > { %v438_v44 = vadd.f32 %v437_v42, %v423_v41  ;;  %v412_v49 = vadd.f32 %v411_v47, %v397_v46 }
  0xda   : > { %v444_v45 = vmul.f32 %v438_v44, %v438_v44  ;;  %v443_v53 = vmul.f32 %v412_v49, %v412_v49 }
  0xdc   : > { %v446_v48 = vadd.f32 %v444_v45, %v442_v43 }
  0xde   : > { %448 = vst [vmem:[%s180_s17] sm:$0xff] %v446_v48  ;;  %v425_v50 = vpop.f32.mrf.mxu2 }
  0xdf   : > { %v439_v51 = vpop.f32.mrf.mxu3 }
  0xe0   : > { %v440_v52 = vadd.f32 %v439_v51, %v425_v50 }
  0xe2   : > { %v445_v54 = vmul.f32 %v440_v52, %v440_v52 }
  0xe4   : > { %v447_v55 = vadd.f32 %v445_v54, %v443_v53 }
  0xe6   : > { %449 = vst [vmem:[%s180_s17 + $0x8] sm:$0xff] %v447_v55 }
  0xe7   : > { %886 = shalt.err (!%p883_p10)
}
  0xe8   : > { %s935_s6 = smov 128   ;;  %s936_s7 = smov 256  }
  0xe9   : > { %s937_s14 = smov 8  }
  0xea   : > { %742 = dma.vmem_to_hbm [thread:$0]  (%p1023_p7), %s463_s19, 256, %s465_s21, %s451_s13, %s935_s6, %s936_s7, %s937_s14  }
  0xeb PF: > { %s479_s18 = sand.u32 1, %s917_s9   ;;  %p1173_p12 = scmp.ge.s32.totalorder %s929_s12, 2 }
  0xec   : > { %s480_s15 = scalar_lea.sflag [#allocation4], %s479_s18 }
  0xed   : > { %p753_p13 = pnand %p1173_p12, %p988_p6 }
  0xef   : > { %p754_p0 = pneg %p753_p13 }
  0xf1   : > { %912 = dma.done.wait (%p754_p0), %s480_s15, 256  }
  0xf2   : > { %914 = vsyncadd (%p754_p0), %s480_s15, 4294967040  ;;  %p16_p3 = scmp.ge.s32.totalorder %s1006_s23, 4   ;;  %s1174_s9 = smov %s921_s10 }
  0xf3   : > { %s1175_s10 = smov %s925_s11  ;;  %s1176_s11 = smov %s1019_s28 }
  0xf4   : > { %s1177_s12 = smov %s1006_s23  ;;  %18 = sbr.rel (!%p16_p3) target bundleno = 6 (0x6), region = 78 }
  0xf9   :  { %486 = vsyncpa [#allocation3], 1 }
  0xfa   :  { %488 = vsyncpa [#allocation3 + $0x1], 1 }
  0xfb   :  { %489 = vsyncpa [#allocation6], 1 }
  0xfc   :  { %491 = vsyncpa [#allocation6 + $0x1], 1 }
  0xfd   :  { %492 = vsyncpa [#allocation4], 1 }
  0xfe   :  { %494 = vsyncpa [#allocation4 + $0x1], 1 }

</bundles_post_ra>
